<compile_context>
chip_gen: v6e
topology: v6e:2x2x1
jax: 0.10.0
libtpu: 0.0.40
codegen_flags: <defaults>
</compile_context>

<pallas_src>
import jax
import jax.numpy as jnp
from jax.experimental import pallas as pl
from jax.experimental.pallas import tpu as pltpu

EMB_DIM = 32          # embedding width produced by the synthetic base models
LANE = 128
MAX_TILE_LANES = 128  # cap: 128 lane-slabs (16384 lanes) per spatial tile
                      # keeps the statically-unrolled reduce loop small


def _round_up(v, m):
    return (v + m - 1) // m * m


def _cdiv(a, b):
    return (a + b - 1) // b


def _pick_tile_n(n, c):
    """Batch rows per block: prefer >=2 tiles (megacore) with nc_t % 8 == 0."""
    for t in (32, 16, 8):
        if n > t and t * c <= 2048:
            return t
    half = (n + 1) // 2
    if n >= 2 and (half * c) % 8 == 0:
        return half          # two small tiles -> both TensorCores busy
    return n                 # single tile; nc_t == n*c equals the full dim


def _vmem_budgets():
    """Generation-aware streaming budget / scoped-VMEM limit (bytes)."""
    cap = 64 * 1024 * 1024   # conservative (v7x-sized) fallback
    try:
        info = pltpu.get_tpu_info()
        cap = int(getattr(info, "vmem_capacity_bytes", cap))
    except Exception:
        pass
    if cap >= 100 * 1024 * 1024:            # v5e / v6e: 128 MiB physical
        return 48 * 1024 * 1024, 64 * 1024 * 1024
    # v7x (64 MiB physical) or unknown: stay well inside the scoped limit
    return 14 * 1024 * 1024, 32 * 1024 * 1024


def fused_forward(doc_x2, doc_x3, selfie_x0,
                  w_doc, b_doc, w_selfie, b_selfie, w_fc2, b_fc2):
    """Single fused pallas_call implementing the whole forward pass."""
    n, c, h, w = doc_x2.shape
    hw = h * w

    TILE_N = _pick_tile_n(n, c)
    nc_t = TILE_N * c                       # rows per streamed block
    nb = _cdiv(n, TILE_N)                   # batch tiles ("parallel" axis)

    # ---- spatial tiling: as big as the streaming budget allows ------------
    stream_budget, vmem_limit = _vmem_budgets()
    bytes_per_lane_col = 3 * 2 * nc_t * 4   # 3 streams, double-buffered, f32
    budget_tile_s = max(LANE, (stream_budget // bytes_per_lane_col) // LANE * LANE)
    tile_s = min(_round_up(hw, LANE), budget_tile_s, MAX_TILE_LANES * LANE)
    nt = _cdiv(hw, tile_s)                  # spatial reduction steps
    m = tile_s // LANE                      # 128-lane slabs per spatial tile
    rem = hw - (nt - 1) * tile_s            # valid lanes in the last tile
    full_slabs = rem // LANE                # slabs that never need masking
    inv_hw = 1.0 / float(hw)

    # ---- host side: metadata reshapes + tiny weight prep only -------------
    x2 = doc_x2.reshape(n * c, hw).astype(jnp.float32)
    x3 = doc_x3.reshape(n * c, hw).astype(jnp.float32)
    x0 = selfie_x0.reshape(n * c, hw).astype(jnp.float32)

    # Per-stream base-model weights, tiled so the Linear runs directly in the
    # packed (n*c, .) layout:  emb = R @ (pooled_sum * Wt) / hw + b,
    # with R = kron(I_TILE_N, 1_c) summing the C channel rows per batch row.
    wt_doc = jnp.tile(w_doc.astype(jnp.float32), (TILE_N, 1))        # (nc_t, E)
    wt_selfie = jnp.tile(w_selfie.astype(jnp.float32), (TILE_N, 1))  # (nc_t, E)
    bd = b_doc.reshape(1, EMB_DIM).astype(jnp.float32)
    bs = b_selfie.reshape(1, EMB_DIM).astype(jnp.float32)
    r_sel = jnp.kron(jnp.eye(TILE_N, dtype=jnp.float32),
                     jnp.ones((1, c), jnp.float32))                  # (TILE_N, nc_t)

    w2 = w_fc2.reshape(2).astype(jnp.float32)   # 1-D SMEM (no 2-D SMEM padding)
    b2 = b_fc2.reshape(1).astype(jnp.float32)

    def kernel(x2_ref, x3_ref, x0_ref, wtd_ref, bd_ref, wts_ref, bs_ref,
               r_ref, w2_ref, b2_ref, out_ref, acc2, acc3, acc0):
        t = pl.program_id(1)
        nt_ = pl.num_programs(1)

        @pl.when(t == 0)
        def _init():
            acc2[...] = jnp.zeros_like(acc2)
            acc3[...] = jnp.zeros_like(acc3)
            acc0[...] = jnp.zeros_like(acc0)

        need_mask = full_slabs < m
        if need_mask:
            lane_idx = jax.lax.broadcasted_iota(jnp.int32, (nc_t, LANE), 1)
            tile_base = t * tile_s

        # Lane-parallel partial sums: pure VPU adds over static 128-lane
        # slabs of the (nc_t, tile_s) block; no cross-lane reduce per step.
        def accumulate(x_ref, acc_ref):
            a = acc_ref[...]                                   # (nc_t, LANE) f32
            for j in range(m):
                slab = x_ref[:, j * LANE:(j + 1) * LANE]
                if need_mask and j >= full_slabs:
                    gpos = lane_idx + (tile_base + j * LANE)
                    slab = jnp.where(gpos < hw, slab, 0.0)
                a = a + slab
            acc_ref[...] = a

        accumulate(x2_ref, acc2)
        accumulate(x3_ref, acc3)
        accumulate(x0_ref, acc0)

        # Embeddings + head once per batch tile, on the last spatial step.
        @pl.when(t == nt_ - 1)
        def _finalize():
            def embed(acc_ref, w_ref, b_ref):
                pooled = jnp.sum(acc_ref[...], axis=-1, keepdims=True)  # (nc_t,1)
                pw = pooled * w_ref[...]                                 # (nc_t,E)
                emb = jnp.dot(r_ref[...], pw,
                              preferred_element_type=jnp.float32)       # (TILE_N,E)
                return emb * inv_hw + b_ref[...]

            e2 = embed(acc2, wtd_ref, bd_ref)
            e3 = embed(acc3, wtd_ref, bd_ref)
            e0 = embed(acc0, wts_ref, bs_ref)

            eps = jnp.float32(1e-6)   # torch PairwiseDistance: ||x1 - x2 + eps||_2
            diff2 = e2 - e0 + eps
            diff3 = e3 - e0 + eps
            d2 = jnp.sqrt(jnp.sum(diff2 * diff2, axis=-1, keepdims=True))
            d3 = jnp.sqrt(jnp.sum(diff3 * diff3, axis=-1, keepdims=True))
            fc = d2 * w2_ref[0] + d3 * w2_ref[1] + b2_ref[0]

            # Single lane-dense (TILE_N, 128) slab -> one unmasked vector store.
            col = jax.lax.broadcasted_iota(jnp.int32, (TILE_N, LANE), 1)
            out_ref[...] = (jnp.where(col == 0, fc, 0.0)
                            + jnp.where(col == 1, d2, 0.0)
                            + jnp.where(col == 2, d3, 0.0))

    flops = int(3 * n * c * hw + 2 * 3 * n * c * EMB_DIM)
    bytes_accessed = int(3 * n * c * hw * 4 + nb * TILE_N * LANE * 4
                         + 2 * nc_t * EMB_DIM * 4)

    out_slab = pl.pallas_call(
        kernel,
        out_shape=jax.ShapeDtypeStruct((nb * TILE_N, LANE), jnp.float32),
        grid_spec=pltpu.PrefetchScalarGridSpec(
            num_scalar_prefetch=0,
            grid=(nb, nt),
            in_specs=[
                # streamed conv activations (f32, no host repack)
                pl.BlockSpec((nc_t, tile_s), lambda b, t: (b, t)),     # doc_x2
                pl.BlockSpec((nc_t, tile_s), lambda b, t: (b, t)),     # doc_x3
                pl.BlockSpec((nc_t, tile_s), lambda b, t: (b, t)),     # selfie_x0
                # tiny weights, fully resident (constant block index)
                pl.BlockSpec((nc_t, EMB_DIM), lambda b, t: (0, 0)),    # wt_doc
                pl.BlockSpec((1, EMB_DIM), lambda b, t: (0, 0)),       # b_doc
                pl.BlockSpec((nc_t, EMB_DIM), lambda b, t: (0, 0)),    # wt_selfie
                pl.BlockSpec((1, EMB_DIM), lambda b, t: (0, 0)),       # b_selfie
                pl.BlockSpec((TILE_N, nc_t), lambda b, t: (0, 0)),     # r_sel
                pl.BlockSpec(memory_space=pltpu.MemorySpace.SMEM),     # w_fc2 (2,)
                pl.BlockSpec(memory_space=pltpu.MemorySpace.SMEM),     # b_fc2 (1,)
            ],
            out_specs=pl.BlockSpec((TILE_N, LANE), lambda b, t: (b, 0)),
            scratch_shapes=[pltpu.VMEM((nc_t, LANE), jnp.float32)] * 3,
        ),
        compiler_params=pltpu.CompilerParams(
            # batch tiles may shard across TensorCores; the spatial reduction
            # must stay sequential (VMEM-resident accumulators).
            dimension_semantics=("parallel", "arbitrary"),
            vmem_limit_bytes=vmem_limit,
        ),
        cost_estimate=pl.CostEstimate(
            flops=flops, transcendentals=2 * n, bytes_accessed=bytes_accessed),
    )(x2, x3, x0, wt_doc, bd, wt_selfie, bs, r_sel, w2, b2)

    output = out_slab[:n, 0:1]
    dist_x2 = out_slab[:n, 1:2]
    dist_x3 = out_slab[:n, 2:3]
    return output, dist_x2, dist_x3


# ----------------------------------------------------------------------------
# Module wrapper (parameter setup + forward, matching the PyTorch semantics)
# ----------------------------------------------------------------------------
def init_params(channels):
    key = jax.random.PRNGKey(42)
    k = jax.random.split(key, 8)
    return {
        # basemodel_doc: Linear(C -> EMB_DIM) after global average pooling
        "w_doc": jax.random.normal(k[0], (channels, EMB_DIM), jnp.float32) * 0.1,
        "b_doc": jax.random.normal(k[1], (1, EMB_DIM), jnp.float32) * 0.1,
        # basemodel_selfie: Linear(C -> EMB_DIM)
        "w_selfie": jax.random.normal(k[2], (channels, EMB_DIM), jnp.float32) * 0.1,
        "b_selfie": jax.random.normal(k[3], (1, EMB_DIM), jnp.float32) * 0.1,
        # fc2: Linear(2 -> 1)
        "w_fc2": jax.random.normal(k[4], (1, 2), jnp.float32) * 0.5,
        "b_fc2": jax.random.normal(k[5], (1,), jnp.float32) * 0.5,
        # fc3: Linear(3 -> 1) — defined in __init__ but unused in forward
        "w_fc3": jax.random.normal(k[6], (1, 3), jnp.float32) * 0.5,
        "b_fc3": jax.random.normal(k[7], (1,), jnp.float32) * 0.5,
    }


def multiscale_docid_forward(params,
                             doc_x1, doc_x2, doc_x3, doc_x0,
                             selfie_x1, selfie_x2, selfie_x3, selfie_x0):
    # Only doc_x2, doc_x3 and selfie_x0 are used — exactly as in the PyTorch forward.
    output, dist_x2, dist_x3 = fused_forward(
        doc_x2, doc_x3, selfie_x0,
        params["w_doc"], params["b_doc"],
        params["w_selfie"], params["b_selfie"],
        params["w_fc2"], params["b_fc2"])
    dict_dist = {"dist_x1": 0, "dist_x2": dist_x2, "dist_x3": dist_x3, "fc": output}
    return output, dict_dist


def _reference_forward(params, doc_x2, doc_x3, selfie_x0):
    """Pure-JAX f32 reference of the same forward (for verification)."""
    def base(x, wt, b):
        n_, c_, h_, w_ = x.shape
        pooled = jnp.mean(x.reshape(n_, c_, h_ * w_), axis=-1)
        return pooled @ wt + b
    f2 = base(doc_x2, params["w_doc"], params["b_doc"])
    f3 = base(doc_x3, params["w_doc"], params["b_doc"])
    fs = base(selfie_x0, params["w_selfie"], params["b_selfie"])
    eps = 1e-6
    d2 = jnp.sqrt(jnp.sum((f2 - fs + eps) ** 2, axis=-1, keepdims=True))
    d3 = jnp.sqrt(jnp.sum((f3 - fs + eps) ** 2, axis=-1, keepdims=True))
    out = (d2 * params["w_fc2"][0, 0] + d3 * params["w_fc2"][0, 1]
           + params["b_fc2"][0])
    return out, d2, d3


if __name__ == "__main__":
    N, C, H, W = 2, 4, 16, 16
    key = jax.random.PRNGKey(0)
    keys = jax.random.split(key, 8)
    inputs = [jax.random.normal(k_, (N, C, H, W), jnp.float32) for k_ in keys]
    (doc_x1, doc_x2, doc_x3, doc_x0,
     selfie_x1, selfie_x2, selfie_x3, selfie_x0) = inputs

    params = init_params(C)

    output, dict_dist = multiscale_docid_forward(
        params, doc_x1, doc_x2, doc_x3, doc_x0,
        selfie_x1, selfie_x2, selfie_x3, selfie_x0)

    jax.block_until_ready(output)
    jax.block_until_ready(dict_dist["dist_x2"])
    jax.block_until_ready(dict_dist["dist_x3"])

    assert output.shape == (N, 1)
    assert dict_dist["dist_x2"].shape == (N, 1)
    assert dict_dist["dist_x3"].shape == (N, 1)

    # Inputs now stream as f32 (no bf16 quantization), so the tolerance only
    # covers f32 accumulation-order / MXU rounding differences.
    ref_out, ref_d2, ref_d3 = _reference_forward(params, doc_x2, doc_x3, selfie_x0)
    assert float(jnp.max(jnp.abs(output - ref_out))) < 2e-3
    assert float(jnp.max(jnp.abs(dict_dist["dist_x2"] - ref_d2))) < 2e-3
    assert float(jnp.max(jnp.abs(dict_dist["dist_x3"] - ref_d3))) < 2e-3

    print("KERNEL_OK")
</pallas_src>

<mosaic_0001>
module attributes {stable_mosaic.version = 11 : i64} {
  func.func @kernel(%arg0: i32, %arg1: i32, %arg2: memref<8x256xf32, #tpu.memory_space<vmem>>, %arg3: memref<8x256xf32, #tpu.memory_space<vmem>>, %arg4: memref<8x256xf32, #tpu.memory_space<vmem>>, %arg5: memref<8x32xf32, #tpu.memory_space<vmem>>, %arg6: memref<1x32xf32, #tpu.memory_space<vmem>>, %arg7: memref<8x32xf32, #tpu.memory_space<vmem>>, %arg8: memref<1x32xf32, #tpu.memory_space<vmem>>, %arg9: memref<2x8xf32, #tpu.memory_space<vmem>>, %arg10: memref<2xf32, #tpu.memory_space<smem>>, %arg11: memref<1xf32, #tpu.memory_space<smem>>, %arg12: memref<2x128xf32, #tpu.memory_space<vmem>>, %arg13: memref<8x128xf32, #tpu.memory_space<vmem>>, %arg14: memref<8x128xf32, #tpu.memory_space<vmem>>, %arg15: memref<8x128xf32, #tpu.memory_space<vmem>>) attributes {dimension_semantics = [#tpu.dimension_semantics<parallel>, #tpu.dimension_semantics<arbitrary>], iteration_bounds = array<i64: 1, 1>, scalar_prefetch = 0 : i64, scratch_operands = 3 : i64, tpu.core_type = #tpu.core_type<tc>, window_params = [{transform_indices = @transform_0, window_bounds = array<i64: 8, 256>}, {transform_indices = @transform_1, window_bounds = array<i64: 8, 256>}, {transform_indices = @transform_2, window_bounds = array<i64: 8, 256>}, {pipeline_mode = #tpu.pipeline_mode<synchronous>, transform_indices = @transform_3, window_bounds = array<i64: 8, 32>}, {pipeline_mode = #tpu.pipeline_mode<synchronous>, transform_indices = @transform_4, window_bounds = array<i64: 1, 32>}, {pipeline_mode = #tpu.pipeline_mode<synchronous>, transform_indices = @transform_5, window_bounds = array<i64: 8, 32>}, {pipeline_mode = #tpu.pipeline_mode<synchronous>, transform_indices = @transform_6, window_bounds = array<i64: 1, 32>}, {pipeline_mode = #tpu.pipeline_mode<synchronous>, transform_indices = @transform_7, window_bounds = array<i64: 2, 8>}, {transform_indices = @transform_8, window_bounds = array<i64: 2>}, {transform_indices = @transform_9, window_bounds = array<i64: 1>}, {transform_indices = @transform_10, window_bounds = array<i64: 2, 128>}]} {
    %c0_i32 = arith.constant 0 : i32
    %0 = arith.cmpi eq, %arg1, %c0_i32 : i32
    %1 = arith.extui %0 : i1 to i32
    %c0_i32_0 = arith.constant 0 : i32
    %2 = arith.cmpi ne, %1, %c0_i32_0 : i32
    scf.if %2 {
      %cst = arith.constant 0.000000e+00 : f32
      %24 = vector.broadcast %cst : f32 to vector<8x128xf32>
      %c0_25 = arith.constant 0 : index
      %c0_26 = arith.constant 0 : index
      %25 = vector.load %arg13[%c0_25, %c0_26] : memref<8x128xf32, #tpu.memory_space<vmem>>, vector<8x128xf32>
      tpu.vector_store %arg13[%c0_25, %c0_26], %24 {strides = array<i32>} : memref<8x128xf32, #tpu.memory_space<vmem>>, vector<8x128xf32>,
      %cst_27 = arith.constant 0.000000e+00 : f32
      %26 = vector.broadcast %cst_27 : f32 to vector<8x128xf32>
      %c0_28 = arith.constant 0 : index
      %c0_29 = arith.constant 0 : index
      %27 = vector.load %arg14[%c0_28, %c0_29] : memref<8x128xf32, #tpu.memory_space<vmem>>, vector<8x128xf32>
      tpu.vector_store %arg14[%c0_28, %c0_29], %26 {strides = array<i32>} : memref<8x128xf32, #tpu.memory_space<vmem>>, vector<8x128xf32>,
      %cst_30 = arith.constant 0.000000e+00 : f32
      %28 = vector.broadcast %cst_30 : f32 to vector<8x128xf32>
      %c0_31 = arith.constant 0 : index
      %c0_32 = arith.constant 0 : index
      %29 = vector.load %arg15[%c0_31, %c0_32] : memref<8x128xf32, #tpu.memory_space<vmem>>, vector<8x128xf32>
      tpu.vector_store %arg15[%c0_31, %c0_32], %28 {strides = array<i32>} : memref<8x128xf32, #tpu.memory_space<vmem>>, vector<8x128xf32>,
    } else {
    }
    %c0 = arith.constant 0 : index
    %c0_1 = arith.constant 0 : index
    %3 = vector.load %arg13[%c0, %c0_1] : memref<8x128xf32, #tpu.memory_space<vmem>>, vector<8x128xf32>
    %c0_2 = arith.constant 0 : index
    %c0_3 = arith.constant 0 : index
    %4 = vector.load %arg2[%c0_2, %c0_3] : memref<8x256xf32, #tpu.memory_space<vmem>>, vector<8x128xf32>
    %5 = arith.addf %3, %4 : vector<8x128xf32>
    %c0_4 = arith.constant 0 : index
    %c128 = arith.constant 128 : index
    %6 = vector.load %arg2[%c0_4, %c128] : memref<8x256xf32, #tpu.memory_space<vmem>>, vector<8x128xf32>
    %7 = arith.addf %5, %6 : vector<8x128xf32>
    %c0_5 = arith.constant 0 : index
    %c0_6 = arith.constant 0 : index
    %8 = vector.load %arg13[%c0_5, %c0_6] : memref<8x128xf32, #tpu.memory_space<vmem>>, vector<8x128xf32>
    tpu.vector_store %arg13[%c0_5, %c0_6], %7 {strides = array<i32>} : memref<8x128xf32, #tpu.memory_space<vmem>>, vector<8x128xf32>,
    %c0_7 = arith.constant 0 : index
    %c0_8 = arith.constant 0 : index
    %9 = vector.load %arg14[%c0_7, %c0_8] : memref<8x128xf32, #tpu.memory_space<vmem>>, vector<8x128xf32>
    %c0_9 = arith.constant 0 : index
    %c0_10 = arith.constant 0 : index
    %10 = vector.load %arg3[%c0_9, %c0_10] : memref<8x256xf32, #tpu.memory_space<vmem>>, vector<8x128xf32>
    %11 = arith.addf %9, %10 : vector<8x128xf32>
    %c0_11 = arith.constant 0 : index
    %c128_12 = arith.constant 128 : index
    %12 = vector.load %arg3[%c0_11, %c128_12] : memref<8x256xf32, #tpu.memory_space<vmem>>, vector<8x128xf32>
    %13 = arith.addf %11, %12 : vector<8x128xf32>
    %c0_13 = arith.constant 0 : index
    %c0_14 = arith.constant 0 : index
    %14 = vector.load %arg14[%c0_13, %c0_14] : memref<8x128xf32, #tpu.memory_space<vmem>>, vector<8x128xf32>
    tpu.vector_store %arg14[%c0_13, %c0_14], %13 {strides = array<i32>} : memref<8x128xf32, #tpu.memory_space<vmem>>, vector<8x128xf32>,
    %c0_15 = arith.constant 0 : index
    %c0_16 = arith.constant 0 : index
    %15 = vector.load %arg15[%c0_15, %c0_16] : memref<8x128xf32, #tpu.memory_space<vmem>>, vector<8x128xf32>
    %c0_17 = arith.constant 0 : index
    %c0_18 = arith.constant 0 : index
    %16 = vector.load %arg4[%c0_17, %c0_18] : memref<8x256xf32, #tpu.memory_space<vmem>>, vector<8x128xf32>
    %17 = arith.addf %15, %16 : vector<8x128xf32>
    %c0_19 = arith.constant 0 : index
    %c128_20 = arith.constant 128 : index
    %18 = vector.load %arg4[%c0_19, %c128_20] : memref<8x256xf32, #tpu.memory_space<vmem>>, vector<8x128xf32>
    %19 = arith.addf %17, %18 : vector<8x128xf32>
    %c0_21 = arith.constant 0 : index
    %c0_22 = arith.constant 0 : index
    %20 = vector.load %arg15[%c0_21, %c0_22] : memref<8x128xf32, #tpu.memory_space<vmem>>, vector<8x128xf32>
    tpu.vector_store %arg15[%c0_21, %c0_22], %19 {strides = array<i32>} : memref<8x128xf32, #tpu.memory_space<vmem>>, vector<8x128xf32>,
    %c0_i32_23 = arith.constant 0 : i32
    %21 = arith.cmpi eq, %arg1, %c0_i32_23 : i32
    %22 = arith.extui %21 : i1 to i32
    %c0_i32_24 = arith.constant 0 : i32
    %23 = arith.cmpi ne, %22, %c0_i32_24 : i32
    scf.if %23 {
      %c0_25 = arith.constant 0 : index
      %c0_26 = arith.constant 0 : index
      %24 = vector.load %arg13[%c0_25, %c0_26] : memref<8x128xf32, #tpu.memory_space<vmem>>, vector<8x128xf32>
      %cst = arith.constant dense<0.000000e+00> : vector<8xf32>
      %25 = vector.multi_reduction <add>, %24, %cst [1] : vector<8x128xf32> to vector<8xf32>
      %26 = vector.shape_cast %25 : vector<8xf32> to vector<8x1xf32>
      %c0_27 = arith.constant 0 : index
      %c0_28 = arith.constant 0 : index
      %27 = vector.load %arg5[%c0_27, %c0_28] : memref<8x32xf32, #tpu.memory_space<vmem>>, vector<8x32xf32>
      %28 = vector.broadcast %26 : vector<8x1xf32> to vector<8x32xf32>
      %29 = arith.mulf %28, %27 : vector<8x32xf32>
      %c0_29 = arith.constant 0 : index
      %c0_30 = arith.constant 0 : index
      %30 = vector.load %arg9[%c0_29, %c0_30] : memref<2x8xf32, #tpu.memory_space<vmem>>, vector<2x8xf32>
      %cst_31 = arith.constant dense<0.000000e+00> : vector<2x32xf32>
      %31 = tpu.matmul %30, %29, %cst_31 {dimension_numbers = #tpu.dot_dimension_numbers<[1], [0], [0], [1], [0, 0, 1, 1], [], []>} : vector<2x8xf32>, vector<8x32xf32>, vector<2x32xf32> -> vector<2x32xf32>
      %cst_32 = arith.constant 3.906250e-03 : f32
      %32 = vector.broadcast %cst_32 : f32 to vector<2x32xf32>
      %33 = arith.mulf %31, %32 : vector<2x32xf32>
      %c0_33 = arith.constant 0 : index
      %c0_34 = arith.constant 0 : index
      %34 = vector.load %arg6[%c0_33, %c0_34] : memref<1x32xf32, #tpu.memory_space<vmem>>, vector<1x32xf32>
      %35 = vector.broadcast %34 : vector<1x32xf32> to vector<2x32xf32>
      %36 = arith.addf %33, %35 : vector<2x32xf32>
      %c0_35 = arith.constant 0 : index
      %c0_36 = arith.constant 0 : index
      %37 = vector.load %arg14[%c0_35, %c0_36] : memref<8x128xf32, #tpu.memory_space<vmem>>, vector<8x128xf32>
      %cst_37 = arith.constant dense<0.000000e+00> : vector<8xf32>
      %38 = vector.multi_reduction <add>, %37, %cst_37 [1] : vector<8x128xf32> to vector<8xf32>
      %39 = vector.shape_cast %38 : vector<8xf32> to vector<8x1xf32>
      %c0_38 = arith.constant 0 : index
      %c0_39 = arith.constant 0 : index
      %40 = vector.load %arg5[%c0_38, %c0_39] : memref<8x32xf32, #tpu.memory_space<vmem>>, vector<8x32xf32>
      %41 = vector.broadcast %39 : vector<8x1xf32> to vector<8x32xf32>
      %42 = arith.mulf %41, %40 : vector<8x32xf32>
      %c0_40 = arith.constant 0 : index
      %c0_41 = arith.constant 0 : index
      %43 = vector.load %arg9[%c0_40, %c0_41] : memref<2x8xf32, #tpu.memory_space<vmem>>, vector<2x8xf32>
      %cst_42 = arith.constant dense<0.000000e+00> : vector<2x32xf32>
      %44 = tpu.matmul %43, %42, %cst_42 {dimension_numbers = #tpu.dot_dimension_numbers<[1], [0], [0], [1], [0, 0, 1, 1], [], []>} : vector<2x8xf32>, vector<8x32xf32>, vector<2x32xf32> -> vector<2x32xf32>
      %cst_43 = arith.constant 3.906250e-03 : f32
      %45 = vector.broadcast %cst_43 : f32 to vector<2x32xf32>
      %46 = arith.mulf %44, %45 : vector<2x32xf32>
      %c0_44 = arith.constant 0 : index
      %c0_45 = arith.constant 0 : index
      %47 = vector.load %arg6[%c0_44, %c0_45] : memref<1x32xf32, #tpu.memory_space<vmem>>, vector<1x32xf32>
      %48 = vector.broadcast %47 : vector<1x32xf32> to vector<2x32xf32>
      %49 = arith.addf %46, %48 : vector<2x32xf32>
      %c0_46 = arith.constant 0 : index
      %c0_47 = arith.constant 0 : index
      %50 = vector.load %arg15[%c0_46, %c0_47] : memref<8x128xf32, #tpu.memory_space<vmem>>, vector<8x128xf32>
      %cst_48 = arith.constant dense<0.000000e+00> : vector<8xf32>
      %51 = vector.multi_reduction <add>, %50, %cst_48 [1] : vector<8x128xf32> to vector<8xf32>
      %52 = vector.shape_cast %51 : vector<8xf32> to vector<8x1xf32>
      %c0_49 = arith.constant 0 : index
      %c0_50 = arith.constant 0 : index
      %53 = vector.load %arg7[%c0_49, %c0_50] : memref<8x32xf32, #tpu.memory_space<vmem>>, vector<8x32xf32>
      %54 = vector.broadcast %52 : vector<8x1xf32> to vector<8x32xf32>
      %55 = arith.mulf %54, %53 : vector<8x32xf32>
      %c0_51 = arith.constant 0 : index
      %c0_52 = arith.constant 0 : index
      %56 = vector.load %arg9[%c0_51, %c0_52] : memref<2x8xf32, #tpu.memory_space<vmem>>, vector<2x8xf32>
      %cst_53 = arith.constant dense<0.000000e+00> : vector<2x32xf32>
      %57 = tpu.matmul %56, %55, %cst_53 {dimension_numbers = #tpu.dot_dimension_numbers<[1], [0], [0], [1], [0, 0, 1, 1], [], []>} : vector<2x8xf32>, vector<8x32xf32>, vector<2x32xf32> -> vector<2x32xf32>
      %cst_54 = arith.constant 3.906250e-03 : f32
      %58 = vector.broadcast %cst_54 : f32 to vector<2x32xf32>
      %59 = arith.mulf %57, %58 : vector<2x32xf32>
      %c0_55 = arith.constant 0 : index
      %c0_56 = arith.constant 0 : index
      %60 = vector.load %arg8[%c0_55, %c0_56] : memref<1x32xf32, #tpu.memory_space<vmem>>, vector<1x32xf32>
      %61 = vector.broadcast %60 : vector<1x32xf32> to vector<2x32xf32>
      %62 = arith.addf %59, %61 : vector<2x32xf32>
      %63 = arith.subf %36, %62 : vector<2x32xf32>
      %cst_57 = arith.constant 9.99999997E-7 : f32
      %64 = vector.broadcast %cst_57 : f32 to vector<2x32xf32>
      %65 = arith.addf %63, %64 : vector<2x32xf32>
      %66 = arith.subf %49, %62 : vector<2x32xf32>
      %cst_58 = arith.constant 9.99999997E-7 : f32
      %67 = vector.broadcast %cst_58 : f32 to vector<2x32xf32>
      %68 = arith.addf %66, %67 : vector<2x32xf32>
      %69 = arith.mulf %65, %65 : vector<2x32xf32>
      %cst_59 = arith.constant dense<0.000000e+00> : vector<2xf32>
      %70 = vector.multi_reduction <add>, %69, %cst_59 [1] : vector<2x32xf32> to vector<2xf32>
      %71 = vector.shape_cast %70 : vector<2xf32> to vector<2x1xf32>
      %72 = math.sqrt %71 : vector<2x1xf32>
      %73 = arith.mulf %68, %68 : vector<2x32xf32>
      %cst_60 = arith.constant dense<0.000000e+00> : vector<2xf32>
      %74 = vector.multi_reduction <add>, %73, %cst_60 [1] : vector<2x32xf32> to vector<2xf32>
      %75 = vector.shape_cast %74 : vector<2xf32> to vector<2x1xf32>
      %76 = math.sqrt %75 : vector<2x1xf32>
      %c0_61 = arith.constant 0 : index
      %77 = memref.load %arg10[%c0_61] : memref<2xf32, #tpu.memory_space<smem>>
      %78 = vector.broadcast %77 : f32 to vector<2x1xf32>
      %79 = arith.mulf %72, %78 : vector<2x1xf32>
      %c1 = arith.constant 1 : index
      %80 = memref.load %arg10[%c1] : memref<2xf32, #tpu.memory_space<smem>>
      %81 = vector.broadcast %80 : f32 to vector<2x1xf32>
      %82 = arith.mulf %76, %81 : vector<2x1xf32>
      %83 = arith.addf %79, %82 : vector<2x1xf32>
      %c0_62 = arith.constant 0 : index
      %84 = memref.load %arg11[%c0_62] : memref<1xf32, #tpu.memory_space<smem>>
      %85 = vector.broadcast %84 : f32 to vector<2x1xf32>
      %86 = arith.addf %83, %85 : vector<2x1xf32>
      %87 = tpu.iota {dimensions = array<i32: 1>} : vector<2x128xi32>
      %c0_i32_63 = arith.constant 0 : i32
      %88 = vector.broadcast %c0_i32_63 : i32 to vector<2x128xi32>
      %89 = arith.cmpi eq, %87, %88 : vector<2x128xi32>
      %cst_64 = arith.constant 0.000000e+00 : f32
      %90 = vector.shape_cast %86 : vector<2x1xf32> to vector<2x1xf32>
      %91 = vector.broadcast %90 : vector<2x1xf32> to vector<2x128xf32>
      %92 = vector.broadcast %cst_64 : f32 to vector<2x128xf32>
      %93 = arith.select %89, %91, %92 : vector<2x128xi1>, vector<2x128xf32>
      %c1_i32 = arith.constant 1 : i32
      %94 = vector.broadcast %c1_i32 : i32 to vector<2x128xi32>
      %95 = arith.cmpi eq, %87, %94 : vector<2x128xi32>
      %cst_65 = arith.constant 0.000000e+00 : f32
      %96 = vector.shape_cast %72 : vector<2x1xf32> to vector<2x1xf32>
      %97 = vector.broadcast %96 : vector<2x1xf32> to vector<2x128xf32>
      %98 = vector.broadcast %cst_65 : f32 to vector<2x128xf32>
      %99 = arith.select %95, %97, %98 : vector<2x128xi1>, vector<2x128xf32>
      %100 = arith.addf %93, %99 : vector<2x128xf32>
      %c2_i32 = arith.constant 2 : i32
      %101 = vector.broadcast %c2_i32 : i32 to vector<2x128xi32>
      %102 = arith.cmpi eq, %87, %101 : vector<2x128xi32>
      %cst_66 = arith.constant 0.000000e+00 : f32
      %103 = vector.shape_cast %76 : vector<2x1xf32> to vector<2x1xf32>
      %104 = vector.broadcast %103 : vector<2x1xf32> to vector<2x128xf32>
      %105 = vector.broadcast %cst_66 : f32 to vector<2x128xf32>
      %106 = arith.select %102, %104, %105 : vector<2x128xi1>, vector<2x128xf32>
      %107 = arith.addf %100, %106 : vector<2x128xf32>
      %c0_67 = arith.constant 0 : index
      %c0_68 = arith.constant 0 : index
      %108 = vector.load %arg12[%c0_67, %c0_68] : memref<2x128xf32, #tpu.memory_space<vmem>>, vector<2x128xf32>
      tpu.vector_store %arg12[%c0_67, %c0_68], %107 {strides = array<i32>} : memref<2x128xf32, #tpu.memory_space<vmem>>, vector<2x128xf32>,
    } else {
    }
    return
  }
  func.func @transform_0(%arg0: i32, %arg1: i32) -> (i32, i32) {
    %c0_i32 = arith.constant 0 : i32
    return %arg0, %arg1 : i32, i32
  }
  func.func @transform_1(%arg0: i32, %arg1: i32) -> (i32, i32) {
    %c0_i32 = arith.constant 0 : i32
    return %arg0, %arg1 : i32, i32
  }
  func.func @transform_2(%arg0: i32, %arg1: i32) -> (i32, i32) {
    %c0_i32 = arith.constant 0 : i32
    return %arg0, %arg1 : i32, i32
  }
  func.func @transform_3(%arg0: i32, %arg1: i32) -> (i32, i32) {
    %c0_i32 = arith.constant 0 : i32
    %c0_i32_0 = arith.constant 0 : i32
    %c0_i32_1 = arith.constant 0 : i32
    return %c0_i32, %c0_i32_0 : i32, i32
  }
  func.func @transform_4(%arg0: i32, %arg1: i32) -> (i32, i32) {
    %c0_i32 = arith.constant 0 : i32
    %c0_i32_0 = arith.constant 0 : i32
    %c0_i32_1 = arith.constant 0 : i32
    return %c0_i32, %c0_i32_0 : i32, i32
  }
  func.func @transform_5(%arg0: i32, %arg1: i32) -> (i32, i32) {
    %c0_i32 = arith.constant 0 : i32
    %c0_i32_0 = arith.constant 0 : i32
    %c0_i32_1 = arith.constant 0 : i32
    return %c0_i32, %c0_i32_0 : i32, i32
  }
  func.func @transform_6(%arg0: i32, %arg1: i32) -> (i32, i32) {
    %c0_i32 = arith.constant 0 : i32
    %c0_i32_0 = arith.constant 0 : i32
    %c0_i32_1 = arith.constant 0 : i32
    return %c0_i32, %c0_i32_0 : i32, i32
  }
  func.func @transform_7(%arg0: i32, %arg1: i32) -> (i32, i32) {
    %c0_i32 = arith.constant 0 : i32
    %c0_i32_0 = arith.constant 0 : i32
    %c0_i32_1 = arith.constant 0 : i32
    return %c0_i32, %c0_i32_0 : i32, i32
  }
  func.func @transform_8(%arg0: i32, %arg1: i32) -> i32 {
    %c0_i32 = arith.constant 0 : i32
    %c0_i32_0 = arith.constant 0 : i32
    return %c0_i32 : i32
  }
  func.func @transform_9(%arg0: i32, %arg1: i32) -> i32 {
    %c0_i32 = arith.constant 0 : i32
    %c0_i32_0 = arith.constant 0 : i32
    return %c0_i32 : i32
  }
  func.func @transform_10(%arg0: i32, %arg1: i32) -> (i32, i32) {
    %c0_i32 = arith.constant 0 : i32
    %c0_i32_0 = arith.constant 0 : i32
    return %arg0, %c0_i32 : i32, i32
  }
}

</mosaic_0001>

<bundles_post_ra>
// kernel: tpu_custom_call.1
= control target key start
LH: loop header
LB: loop body
LE: loop exit
PB: predicated region body
PF: predicated region fallthrough
CT: control target
= control target key end

     0   :  { %16 = vsyncpa [#allocation7], 0  ;;  %s700_s0 = inlined_call_operand.hbm [shape: f32[8,256], index: 0, kind: input, shape index: {}]   ;;  %s701_s1 = inlined_call_operand.hbm [shape: f32[8,256], index: 1, kind: input, shape index: {}]   ;;  %s702_s2 = inlined_call_operand.hbm [shape: f32[8,256], index: 2, kind: input, shape index: {}]   ;;  %s703_s3 = inlined_call_operand.hbm [shape: f32[8,32], index: 3, kind: input, shape index: {}]   ;;  %s704_s4 = inlined_call_operand.vmem [shape: f32[1,32], index: 4, kind: input, shape index: {}]   ;;  %s705_s5 = inlined_call_operand.vmem [shape: f32[8,32], index: 5, kind: input, shape index: {}]   ;;  %s706_s6 = inlined_call_operand.vmem [shape: f32[1,32], index: 6, kind: input, shape index: {}]   ;;  %s707_s7 = inlined_call_operand.vmem [shape: f32[2,8], index: 7, kind: input, shape index: {}]   ;;  %s708_s8 = inlined_call_operand.vmem [shape: f32[2], index: 8, kind: input, shape index: {}]   ;;  %s709_s9 = inlined_call_operand.<no memory space> [shape: f32[1], index: 9, kind: input, shape index: {}]   ;;  %s710_s10 = inlined_call_operand.hbm [shape: f32[2,128], index: 10, kind: output, shape index: {}]  }
   0x1   :  { %17 = vsyncpa [#allocation11], 0 }
   0x2   :  { %18 = vsyncpa [#allocation14], 0 }
   0x3   :  { %19 = vsyncpa [#allocation9], 0 }
   0x4   :  { %20 = vsyncpa [#allocation8], 0  ;;  %s601_s13 = smov [#allocation10]   ;;  %s602_s15 = smov [#allocation6]  }
   0x5   :  { %s37_s14 = sshll.u32 %s601_s13, 4  ;;  %s27_s16 = sshll.u32 %s602_s15, 4  ;;  %s38_s14 = int_to_ptr.vmem [resolvable:$true] %s37_s14  ;;  %s28_s16 = int_to_ptr.vmem [resolvable:$true] %s27_s16 }
   0x6   :  { %s487_s17 = scalar_lea.vmem %s38_s14, 256  ;;  %p492_p1 = scmp.lt.s32.totalorder %s38_s14, %s38_s14 }
   0x7   :  { %p488_p0 = scmp.ne.s32.totalorder %s38_s14, %s487_s17  ;;  %p493_p2 = scmp.lt.s32.totalorder %s487_s17, %s487_s17 }
   0x9   :  { %p494_p3 = por %p493_p2, %p492_p1 }
   0xb   :  { %p495_p4 = pnand %p494_p3, %p488_p0 }
   0xd   :  { %498 = shalt.err (!%p495_p4)
}
   0xe   :  { %40 = dma.hbm_to_vmem [thread:$0]  %s701_s1, 256, %s38_s14, [#allocation11]  }
   0xf   :  { %s507_s20 = scalar_lea.vmem %s28_s16, 256  ;;  %p512_p6 = scmp.lt.s32.totalorder %s28_s16, %s28_s16 }
  0x10   :  { %p508_p5 = scmp.ne.s32.totalorder %s28_s16, %s507_s20  ;;  %p513_p7 = scmp.lt.s32.totalorder %s507_s20, %s507_s20 }
  0x12   :  { %p514_p8 = por %p513_p7, %p512_p6 }
  0x14   :  { %p515_p9 = pnand %p514_p8, %p508_p5 }
  0x16   :  { %518 = shalt.err (!%p515_p9)
}
  0x17   :  { %30 = dma.hbm_to_vmem [thread:$0]  %s700_s0, 256, %s28_s16, [#allocation7]  }
  0x18   :  { %s603_s23 = smov [#allocation12]   ;;  %s604_s25 = smov [#allocation13]  }
  0x19   :  { %s47_s24 = sshll.u32 %s603_s23, 4  ;;  %s57_s26 = sshll.u32 %s604_s25, 4  ;;  %s48_s24 = int_to_ptr.vmem [resolvable:$true] %s47_s24  ;;  %s58_s26 = int_to_ptr.vmem [resolvable:$true] %s57_s26 }
  0x1a   :  { %s527_s27 = scalar_lea.vmem %s48_s24, 256  ;;  %p532_p11 = scmp.lt.s32.totalorder %s48_s24, %s48_s24 }
  0x1b   :  { %p528_p10 = scmp.ne.s32.totalorder %s48_s24, %s527_s27  ;;  %p533_p12 = scmp.lt.s32.totalorder %s527_s27, %s527_s27 }
  0x1d   :  { %p534_p13 = por %p533_p12, %p532_p11 }
  0x1f   :  { %p535_p0 = pnand %p534_p13, %p528_p10 }
  0x21   :  { %538 = shalt.err (!%p535_p0)
}
  0x22   :  { %50 = dma.hbm_to_vmem [thread:$0]  %s702_s2, 256, %s48_s24, [#allocation11]  }
  0x23   :  { %s547_s29 = scalar_lea.vmem %s58_s26, 128  ;;  %p552_p2 = scmp.lt.s32.totalorder %s58_s26, %s58_s26 }
  0x24   :  { %p548_p1 = scmp.ne.s32.totalorder %s58_s26, %s547_s29  ;;  %p553_p3 = scmp.lt.s32.totalorder %s547_s29, %s547_s29 }
  0x26   :  { %p554_p4 = por %p553_p3, %p552_p2 }
  0x28   :  { %p555_p5 = pnand %p554_p4, %p548_p1 }
  0x2a   :  { %558 = shalt.err (!%p555_p5)
}
  0x2b   :  { %60 = dma.hbm_to_vmem [thread:$0]  %s703_s3, 128, %s58_s26, [#allocation14]  }
  0x2c   :  { %s75_s13 = sshll.u32 %s708_s8, 4  ;;  %s76_s13 = int_to_ptr.vmem [resolvable:$true] %s75_s13 }
  0x2d   :  { %s559_s14 = scalar_lea.vmem %s76_s13, 16  ;;  %p564_p7 = scmp.lt.s32.totalorder %s76_s13, %s76_s13 }
  0x2e   :  { %p560_p6 = scmp.ne.s32.totalorder %s76_s13, %s559_s14  ;;  %p565_p8 = scmp.lt.s32.totalorder %s559_s14, %s559_s14 }
  0x30   :  { %p566_p9 = por %p565_p8, %p564_p7 }
  0x32   :  { %p567_p10 = pnand %p566_p9, %p560_p6 }
  0x34   :  { %570 = shalt.err (!%p567_p10)
}
  0x35   :  { %s605_s2 = smov [#allocation15]  }
  0x36   :  { %78 = dma.vmem_to_smem %s76_s13, 16, %s605_s2, [#allocation9]  }
  0x37   :  { %591 = dma.done.wait [#allocation7], 256  }
  0x38   :  { %592 = vsyncadd [#allocation7], 4294967040 }
  0x39   :  { %593 = dma.done.wait [#allocation11], 512  }
  0x3a   :  { %594 = vsyncadd [#allocation11], 4294966784 }
  0x3b   :  { %595 = dma.done.wait [#allocation14], 128  }
  0x3c   :  { %596 = vsyncadd [#allocation14], 4294967168 }
  0x3d   :  { %597 = dma.done.wait [#allocation9], 16  }
  0x3e   :  { %598 = vsyncadd [#allocation9], 4294967280 }
  0x3f   :  { %96 = sfence }
  0x40   :  { %v105_v0 = vld [vmem:[#allocation6] sm:$0xff]  ;;  %v107_v1 = vld [vmem:[#allocation6 + $0x8] sm:$0xff]  ;;  %v111_v5 = vld [vmem:[#allocation10] sm:$0xff]  ;;  %v606_v9 = vmov 0.0   ;;  %vm607_vm0 = vmmov 0   ;;  %vm131_vm1 = vcmask 64512   ;;  %v411_v47 = vlaneseq }
  0x41   :  { %v117_v2 = vld [vmem:[#allocation12] sm:$0xff]  ;;  %v108_v3 = vadd.f32 %v107_v1, %v105_v0  ;;  %v119_v4 = vld [vmem:[#allocation12 + $0x8] sm:$0xff]  ;;  %v113_v6 = vld [vmem:[#allocation10 + $0x8] sm:$0xff]  ;;  %452 = vmatprep.subr.mxu0 %v606_v9  ;;  %457 = vmatprep.subr.mxu1 %v606_v9  ;;  %vm379_vm2 = vcmask 254976   ;;  %v409_v59 = vstv %s709_s9  ;;  %s608_s21 = smov [#allocation16]  }
  0x42   :  { %v120_v7 = vadd.f32 %v119_v4, %v117_v2  ;;  %v114_v8 = vadd.f32 %v113_v6, %v111_v5  ;;  %454 = vmatprep.mubr.msk.f32.mxu0 %vm607_vm0, %v606_v9  ;;  %459 = vmatprep.mubr.msk.f32.mxu1 %vm607_vm0, %v606_v9  ;;  %v128_v10 = vld [vmem:[#allocation13] sm:$0xff]  ;;  %v293_v11 = vld [vmem:[%s705_s5] sm:$0xff]  ;;  %v412_v57 = vand.u32 127, %v411_v47  ;;  %s428_s22 = sshll.u32 %s608_s21, 4  ;;  %s429_s22 = int_to_ptr.vmem [resolvable:$true] %s428_s22 }
  0x43   :  { %126 = vadd.xlane.f32.xlu0 %v108_v3  ;;  %v130_v15 = vld [vmem:[%s707_s7] sm:$0x3]  ;;  %s571_s23 = scalar_lea.vmem %s429_s22, 32  ;;  %p576_p12 = scmp.lt.s32.totalorder %s429_s22, %s429_s22 }
  0x44   :  { %291 = vadd.xlane.f32.xlu1 %v120_v7  ;;  %v441_v22 = vld [vmem:[%s704_s4] ss:$0 sm:$0xff]  ;;  %s401_s4 = sld [smem:[#allocation15]]  ;;  %vm413_vm7 = vcmp.eq.s32.totalorder %v412_v57, 0  ;;  %vm415_vm8 = vcmp.eq.s32.totalorder %v412_v57, 1  ;;  %vm418_vm9 = vcmp.eq.s32.totalorder %v412_v57, 2  ;;  %p572_p11 = scmp.ne.s32.totalorder %s429_s22, %s571_s23 }
  0x45   :  { %v444_v25 = vld [vmem:[%s706_s6] ss:$0 sm:$0xff]  ;;  %s445_s6 = sld [smem:[#allocation15 + $0x1]]  ;;  %p577_p13 = scmp.lt.s32.totalorder %s571_s23, %s571_s23 }
  0x47   :  { %215 = vadd.xlane.f32.xlu0 %v114_v8  ;;  %p578_p0 = por %p577_p13, %p576_p12 }
  0x49   :  { %p579_p1 = pnand %p578_p0, %p572_p11 }
  0x4a   :  { %v402_v46 = vstv %s401_s4 }
  0x4b   :  { %v405_v50 = vstv %s445_s6 }
  0xcc   :  { %v127_v12 = vpop.xlane.xlu0 %126 }
  0xcd   :  { %v129_v13 = vmul.f32 %v128_v10, %v127_v12  ;;  %v292_v14 = vpop.xlane.xlu1 %291 }
  0xce   :  { %v294_v16 = vmul.f32 %v293_v11, %v292_v14 }
  0xcf   :  { %453 = vmatpush3.msra.mxu0 %v129_v13 }
  0xd0   :  { %455 = vmatmul.mubr.msk.f32.vlgmr.msra.gmra.mxu0 %vm131_vm1, %v130_v15  ;;  %462 = vmatprep.subr.mxu0 %v606_v9  ;;  %v216_v17 = vpop.xlane.xlu0 %215 }
  0xd1   :  { %v217_v18 = vmul.f32 %v216_v17, %v128_v10  ;;  %463 = vmatpush3.msra.mxu0 %v294_v16  ;;  %464 = vmatprep.mubr.msk.f32.mxu0 %vm607_vm0, %v606_v9 }
  0xd3   :  { %458 = vmatpush3.msra.mxu1 %v217_v18 }
  0xd4   :  { %460 = vmatmul.mubr.msk.f32.vlgmr.msra.gmra.mxu1 %vm131_vm1, %v130_v15  ;;  %465 = vmatmul.mubr.msk.f32.vlgmr.msra.gmra.mxu0 %vm131_vm1, %v130_v15 }
 0x190   :  { %v201_v19 = vpop.f32.mrf.mxu0 }
 0x191   :  { %v205_v21 = vmul.f32 0.00390625, %v201_v19 }
 0x192   :  { %v456_v20 = vpop.f32.mrf.mxu0 }
 0x193   :  { %v213_v30 = vadd.f32 %v441_v22, %v205_v21 }
 0x194   :  { %v284_v23 = vpop.f32.mrf.mxu1  ;;  %v361_v24 = vpop.f32.mrf.mxu0 }
 0x195   :  { %v288_v26 = vmul.f32 0.00390625, %v284_v23  ;;  %v365_v27 = vmul.f32 0.00390625, %v361_v24 }
 0x196   :  { %v461_v28 = vpop.f32.mrf.mxu1  ;;  %v466_v29 = vpop.f32.mrf.mxu0 }
 0x197   :  { %v289_v31 = vadd.f32 %v441_v22, %v288_v26  ;;  %v373_v32 = vadd.f32 %v444_v25, %v365_v27 }
 0x199   :  { %v374_v33 = vsub.f32 %v213_v30, %v373_v32  ;;  %v376_v34 = vsub.f32 %v289_v31, %v373_v32 }
 0x19b   :  { %v375_v35 = vadd.f32 1e-06, %v374_v33  ;;  %v377_v36 = vadd.f32 1e-06, %v376_v34 }
 0x19d   :  { %v378_v37 = vmul.f32 %v375_v35, %v375_v35  ;;  %v390_v38 = vmul.f32 %v377_v36, %v377_v36 }
 0x19f   :  { %v380_v39 = vsel %vm379_vm2, %v378_v37, 0.0  ;;  %v391_v40 = vsel %vm379_vm2, %v390_v38, 0.0 }
 0x1a0   :  { %381 = vadd.xlane.f32.xlu1 %v380_v39  ;;  %392 = vadd.xlane.f32.xlu0 %v391_v40 }
 0x229   :  { %v382_v41 = vpop.xlane.xlu1 %381  ;;  %v393_v42 = vpop.xlane.xlu0 %392 }
 0x22a   :  { %475 = vrsqrt.f32 %v382_v41  ;;  %vm385_vm3 = vcmp.eq.f32.partialorder %v382_v41, inf  ;;  %v388_v48 = vand.u32 2147483648, %v382_v41  ;;  %vm387_vm4 = vcmp.eq.f32.partialorder %v382_v41, 0.0 }
 0x22b   :  { %477 = vrsqrt.f32 %v393_v42  ;;  %vm396_vm5 = vcmp.eq.f32.partialorder %v393_v42, inf  ;;  %v399_v52 = vand.u32 2147483648, %v393_v42  ;;  %vm398_vm6 = vcmp.eq.f32.partialorder %v393_v42, 0.0 }
 0x237   :  { %v476_v43 = vpop.eup %475 }
 0x238   :  { %v478_v44 = vpop.eup %477  ;;  %v384_v45 = vmul.f32 %v476_v43, %v382_v41 }
 0x239   :  { %v395_v49 = vmul.f32 %v478_v44, %v393_v42 }
 0x23a   :  { %v386_v51 = vsel %vm385_vm3, %v382_v41, %v384_v45 }
 0x23b   :  { %v389_v53 = vsel %vm387_vm4, %v388_v48, %v386_v51  ;;  %v397_v54 = vsel %vm396_vm5, %v393_v42, %v395_v49 }
 0x23c   :  { %v400_v55 = vsel %vm398_vm6, %v399_v52, %v397_v54  ;;  %v403_v56 = vmul.f32 %v402_v46, %v389_v53  ;;  %v416_v63 = vsel %vm415_vm8, %v389_v53, 0.0 }
 0x23d   :  { %v406_v58 = vmul.f32 %v405_v50, %v400_v55  ;;  %v419_v1 = vsel %vm418_vm9, %v400_v55, 0.0 }
 0x23f   :  { %v407_v60 = vadd.f32 %v406_v58, %v403_v56 }
 0x241   :  { %v410_v61 = vadd.f32 %v409_v59, %v407_v60 }
 0x243   :  { %v414_v62 = vsel %vm413_vm7, %v410_v61, 0.0 }
 0x244   :  { %v417_v0 = vadd.f32 %v416_v63, %v414_v62 }
 0x246   :  { %v420_v2 = vadd.f32 %v419_v1, %v417_v0 }
 0x248   :  { %421 = vst [vmem:[#allocation16] sm:$0x3] %v420_v2 }
 0x249   :  { %582 = shalt.err (!%p579_p1)
}
 0x24a   :  { %431 = dma.vmem_to_hbm [thread:$0]  %s429_s22, 32, %s710_s10, [#allocation8]  }
 0x24b   :  { %599 = dma.done.wait [#allocation8], 32  }
 0x24c   :  { %600 = vsyncadd [#allocation8], 4294967264 }
 0x24d   :  { %435 = vsyncpa [#allocation7], 1 }
 0x24e   :  { %436 = vsyncpa [#allocation11], 1 }
 0x24f   :  { %437 = vsyncpa [#allocation14], 1 }
 0x250   :  { %438 = vsyncpa [#allocation8], 1 }
 0x251   :  { %439 = vsyncpa [#allocation9], 1 }

</bundles_post_ra>
